<compile_context>
chip_gen: v6e
topology: v6e:2x2x1
jax: 0.10.0
libtpu: 0.0.40
codegen_flags: <defaults>
</compile_context>

<pallas_src>
import functools

import jax
import jax.numpy as jnp
from jax.experimental import pallas as pl
from jax.experimental.pallas import tpu as pltpu


_SQRT_2_OVER_PI = 0.7978845608028654


def _gelu_new(x):
    # GPT-J "gelu_new" (tanh approximation). tanh lowers to the EUP slot, so it
    # hides under MXU/DMA time; keep it in f32 (v5e EUP has no bf16 path).
    return 0.5 * x * (1.0 + jnp.tanh(_SQRT_2_OVER_PI * (x + 0.044715 * x * x * x)))


def gptj_mlp_kernel(x_ref, w1_ref, b1_ref, w2_ref, b2_ref, o_ref, acc_ref):
    """One (token-tile i, intermediate-tile k) grid step.

    x_ref  : [tT, H]       token tile (compute dtype)
    w1_ref : [H, tI]       fc_in weight column slab for this k
    b1_ref : [1, tI]       fc_in bias slice for this k
    w2_ref : [tI, H]       fc_out weight row slab for this k
    b2_ref : [1, H]        fc_out bias (only consumed at k == last)
    o_ref  : [tT, H]       output tile (written only at k == last)
    acc_ref: [tT, H] f32   VMEM accumulator, carried across the k (I) axis
    """
    k = pl.program_id(1)

    @pl.when(k == 0)
    def _init():
        acc_ref[...] = jnp.zeros_like(acc_ref)

    # fc_in partial: [tT, H] @ [H, tI] -> f32 on the MXU, + per-k bias slice.
    h = jnp.dot(x_ref[...], w1_ref[...], preferred_element_type=jnp.float32)
    h = _gelu_new(h + b1_ref[...].astype(jnp.float32))

    # fc_out partial: [tT, tI] @ [tI, H], accumulated in f32.
    acc_ref[...] += jnp.dot(h.astype(w2_ref.dtype), w2_ref[...],
                            preferred_element_type=jnp.float32)

    @pl.when(k == pl.num_programs(1) - 1)
    def _finalize():
        o_ref[...] = (acc_ref[...] + b2_ref[...].astype(jnp.float32)
                      ).astype(o_ref.dtype)


@functools.partial(
    jax.jit, static_argnames=("tile_t", "tile_i", "compute_dtype"))
def gptj_mlp(x, w1, b1, w2, b2, *, tile_t=None, tile_i=None,
             compute_dtype=None):
    """GPT-J MLP: gelu_new(x @ w1 + b1) @ w2 + b2.

    x: [T, H]; w1: [H, I]; b1: [1, I]; w2: [I, H]; b2: [1, H] -> [T, H]

    compute_dtype: optional dtype (e.g. jnp.bfloat16) for x / W1 / W2 MXU
    operands; accumulation and biases stay f32; output keeps x's input dtype.
    """
    T, H = x.shape
    I = w1.shape[1]
    out_dtype = x.dtype

    if compute_dtype is not None:
        x = x.astype(compute_dtype)
        w1 = w1.astype(compute_dtype)
        w2 = w2.astype(compute_dtype)

    # Token tile: MXU-friendly (multiple of 256 on v6e/v7x when T allows) and
    # small enough to keep several grid blocks for pipelining / megacore.
    if tile_t is None:
        tile_t = min(256, T)
    # Intermediate (reduction) tile: streams weight slabs instead of keeping
    # full [H, I] / [I, H] matrices resident in VMEM.
    if tile_i is None:
        tile_i = min(512, I)
    assert T % tile_t == 0, (T, tile_t)
    assert I % tile_i == 0, (I, tile_i)

    grid = (T // tile_t, I // tile_i)

    # NOTE: for real GPT-J shapes on v7x (64 MiB VMEM), cap tile_i at ~512-1024
    # (bf16) and pass vmem_limit_bytes explicitly via pltpu.CompilerParams.
    return pl.pallas_call(
        gptj_mlp_kernel,
        out_shape=jax.ShapeDtypeStruct((T, H), out_dtype),
        grid_spec=pltpu.PrefetchScalarGridSpec(
            num_scalar_prefetch=0,
            grid=grid,
            in_specs=[
                pl.BlockSpec((tile_t, H), lambda i, k: (i, 0)),   # x token tile
                pl.BlockSpec((H, tile_i), lambda i, k: (0, k)),   # W1 col slab
                pl.BlockSpec((1, tile_i), lambda i, k: (0, k)),   # b1 slice
                pl.BlockSpec((tile_i, H), lambda i, k: (k, 0)),   # W2 row slab
                pl.BlockSpec((1, H), lambda i, k: (0, 0)),        # b2
            ],
            out_specs=pl.BlockSpec((tile_t, H), lambda i, k: (i, 0)),
            scratch_shapes=[pltpu.VMEM((tile_t, H), jnp.float32)],
        ),
        compiler_params=pltpu.CompilerParams(
            dimension_semantics=("parallel", "arbitrary")),
    )(x, w1, b1, w2, b2)


def reference_mlp(x, w1, b1, w2, b2):
    xf = x.astype(jnp.float32)
    h = xf @ w1.astype(jnp.float32) + b1.astype(jnp.float32)
    h = _gelu_new(h)
    out = h @ w2.astype(jnp.float32) + b2.astype(jnp.float32)
    return out


def _make_params(key, T, H, I, dtype=jnp.float32):
    kx, k1, kb1, k2, kb2 = jax.random.split(key, 5)
    x = jax.random.normal(kx, (T, H), dtype=dtype)
    w1 = jax.random.normal(k1, (H, I), dtype=dtype) * (1.0 / H) ** 0.5
    b1 = jax.random.normal(kb1, (1, I), dtype=dtype) * 0.01
    w2 = jax.random.normal(k2, (I, H), dtype=dtype) * (1.0 / I) ** 0.5
    b2 = jax.random.normal(kb2, (1, H), dtype=dtype) * 0.01
    return x, w1, b1, w2, b2


if __name__ == "__main__":
    key = jax.random.PRNGKey(0)
    k_a, k_b = jax.random.split(key)

    # --- Test 1: GPTJMLP-consistent tiny shapes (n_embd=32, inner=4*32=128). ---
    # NOTE: last dim 32 is not lane-dense (real GPT-J H=4096 is); these shapes
    # are only for correctness, not representative of performance.
    T, H, I = 8, 32, 128
    x, w1, b1, w2, b2 = _make_params(k_a, T, H, I)
    out = jax.block_until_ready(gptj_mlp(x, w1, b1, w2, b2))
    ref = reference_mlp(x, w1, b1, w2, b2)
    assert out.shape == (T, H)
    assert jnp.allclose(out, ref, atol=1e-5, rtol=1e-5), "f32 tiny-shape mismatch"

    # --- Test 2: exercise the multi-block grid (token axis + I reduction). ---
    T2, H2, I2 = 16, 128, 512
    x2, w12, b12, w22, b22 = _make_params(k_b, T2, H2, I2)
    out2 = jax.block_until_ready(
        gptj_mlp(x2, w12, b12, w22, b22, tile_t=8, tile_i=128))  # grid (2, 4)
    ref2 = reference_mlp(x2, w12, b12, w22, b22)
    assert jnp.allclose(out2, ref2, atol=1e-4, rtol=1e-4), "f32 tiled mismatch"

    # --- Test 3: bf16 weight-streaming path (f32 accumulation). ---
    out3 = jax.block_until_ready(
        gptj_mlp(x2, w12, b12, w22, b22, tile_t=8, tile_i=128,
                 compute_dtype=jnp.bfloat16))
    assert jnp.allclose(out3.astype(jnp.float32), ref2, atol=1e-1, rtol=1e-1), \
        "bf16 tiled mismatch"

    print("KERNEL_OK")
</pallas_src>

<mosaic_0001>
module attributes {stable_mosaic.version = 11 : i64} {
  func.func @gptj_mlp_kernel(%arg0: i32, %arg1: i32, %arg2: memref<8x32xf32, #tpu.memory_space<vmem>>, %arg3: memref<32x128xf32, #tpu.memory_space<vmem>>, %arg4: memref<1x128xf32, #tpu.memory_space<vmem>>, %arg5: memref<128x32xf32, #tpu.memory_space<vmem>>, %arg6: memref<1x32xf32, #tpu.memory_space<vmem>>, %arg7: memref<8x32xf32, #tpu.memory_space<vmem>>, %arg8: memref<8x32xf32, #tpu.memory_space<vmem>>) attributes {dimension_semantics = [#tpu.dimension_semantics<parallel>, #tpu.dimension_semantics<arbitrary>], iteration_bounds = array<i64: 1, 1>, scalar_prefetch = 0 : i64, scratch_operands = 1 : i64, tpu.core_type = #tpu.core_type<tc>, window_params = [{transform_indices = @transform_0, window_bounds = array<i64: 8, 32>}, {transform_indices = @transform_1, window_bounds = array<i64: 32, 128>}, {transform_indices = @transform_2, window_bounds = array<i64: 1, 128>}, {transform_indices = @transform_3, window_bounds = array<i64: 128, 32>}, {pipeline_mode = #tpu.pipeline_mode<synchronous>, transform_indices = @transform_4, window_bounds = array<i64: 1, 32>}, {transform_indices = @transform_5, window_bounds = array<i64: 8, 32>}]} {
    %c0_i32 = arith.constant 0 : i32
    %0 = arith.cmpi eq, %arg1, %c0_i32 : i32
    %1 = arith.extui %0 : i1 to i32
    %c0_i32_0 = arith.constant 0 : i32
    %2 = arith.cmpi ne, %1, %c0_i32_0 : i32
    scf.if %2 {
      %cst_19 = arith.constant 0.000000e+00 : f32
      %30 = vector.broadcast %cst_19 : f32 to vector<8x32xf32>
      %c0_20 = arith.constant 0 : index
      %c0_21 = arith.constant 0 : index
      %31 = vector.load %arg8[%c0_20, %c0_21] : memref<8x32xf32, #tpu.memory_space<vmem>>, vector<8x32xf32>
      tpu.vector_store %arg8[%c0_20, %c0_21], %30 {strides = array<i32>} : memref<8x32xf32, #tpu.memory_space<vmem>>, vector<8x32xf32>,
    } else {
    }
    %c0 = arith.constant 0 : index
    %c0_1 = arith.constant 0 : index
    %3 = vector.load %arg2[%c0, %c0_1] : memref<8x32xf32, #tpu.memory_space<vmem>>, vector<8x32xf32>
    %c0_2 = arith.constant 0 : index
    %c0_3 = arith.constant 0 : index
    %4 = vector.load %arg3[%c0_2, %c0_3] : memref<32x128xf32, #tpu.memory_space<vmem>>, vector<32x128xf32>
    %cst = arith.constant dense<0.000000e+00> : vector<8x128xf32>
    %5 = tpu.matmul %3, %4, %cst {dimension_numbers = #tpu.dot_dimension_numbers<[1], [0], [0], [1], [0, 0, 1, 1], [], []>} : vector<8x32xf32>, vector<32x128xf32>, vector<8x128xf32> -> vector<8x128xf32>
    %c0_4 = arith.constant 0 : index
    %c0_5 = arith.constant 0 : index
    %6 = vector.load %arg4[%c0_4, %c0_5] : memref<1x128xf32, #tpu.memory_space<vmem>>, vector<1x128xf32>
    %7 = vector.broadcast %6 : vector<1x128xf32> to vector<8x128xf32>
    %8 = arith.addf %5, %7 : vector<8x128xf32>
    %cst_6 = arith.constant 5.000000e-01 : f32
    %9 = vector.broadcast %cst_6 : f32 to vector<8x128xf32>
    %10 = arith.mulf %9, %8 : vector<8x128xf32>
    %cst_7 = arith.constant 4.471500e-02 : f32
    %11 = vector.broadcast %cst_7 : f32 to vector<8x128xf32>
    %12 = arith.mulf %11, %8 : vector<8x128xf32>
    %13 = arith.mulf %12, %8 : vector<8x128xf32>
    %14 = arith.mulf %13, %8 : vector<8x128xf32>
    %15 = arith.addf %8, %14 : vector<8x128xf32>
    %cst_8 = arith.constant 0.797884583 : f32
    %16 = vector.broadcast %cst_8 : f32 to vector<8x128xf32>
    %17 = arith.mulf %16, %15 : vector<8x128xf32>
    %18 = math.tanh %17 : vector<8x128xf32>
    %cst_9 = arith.constant 1.000000e+00 : f32
    %19 = vector.broadcast %cst_9 : f32 to vector<8x128xf32>
    %20 = arith.addf %19, %18 : vector<8x128xf32>
    %21 = arith.mulf %10, %20 : vector<8x128xf32>
    %c0_10 = arith.constant 0 : index
    %c0_11 = arith.constant 0 : index
    %22 = vector.load %arg8[%c0_10, %c0_11] : memref<8x32xf32, #tpu.memory_space<vmem>>, vector<8x32xf32>
    %c0_12 = arith.constant 0 : index
    %c0_13 = arith.constant 0 : index
    %23 = vector.load %arg5[%c0_12, %c0_13] : memref<128x32xf32, #tpu.memory_space<vmem>>, vector<128x32xf32>
    %cst_14 = arith.constant dense<0.000000e+00> : vector<8x32xf32>
    %24 = tpu.matmul %21, %23, %cst_14 {dimension_numbers = #tpu.dot_dimension_numbers<[1], [0], [0], [1], [0, 0, 1, 1], [], []>} : vector<8x128xf32>, vector<128x32xf32>, vector<8x32xf32> -> vector<8x32xf32>
    %25 = arith.addf %22, %24 : vector<8x32xf32>
    %c0_15 = arith.constant 0 : index
    %c0_16 = arith.constant 0 : index
    %26 = vector.load %arg8[%c0_15, %c0_16] : memref<8x32xf32, #tpu.memory_space<vmem>>, vector<8x32xf32>
    tpu.vector_store %arg8[%c0_15, %c0_16], %25 {strides = array<i32>} : memref<8x32xf32, #tpu.memory_space<vmem>>, vector<8x32xf32>,
    %c0_i32_17 = arith.constant 0 : i32
    %27 = arith.cmpi eq, %arg1, %c0_i32_17 : i32
    %28 = arith.extui %27 : i1 to i32
    %c0_i32_18 = arith.constant 0 : i32
    %29 = arith.cmpi ne, %28, %c0_i32_18 : i32
    scf.if %29 {
      %c0_19 = arith.constant 0 : index
      %c0_20 = arith.constant 0 : index
      %30 = vector.load %arg8[%c0_19, %c0_20] : memref<8x32xf32, #tpu.memory_space<vmem>>, vector<8x32xf32>
      %c0_21 = arith.constant 0 : index
      %c0_22 = arith.constant 0 : index
      %31 = vector.load %arg6[%c0_21, %c0_22] : memref<1x32xf32, #tpu.memory_space<vmem>>, vector<1x32xf32>
      %32 = vector.broadcast %31 : vector<1x32xf32> to vector<8x32xf32>
      %33 = arith.addf %30, %32 : vector<8x32xf32>
      %c0_23 = arith.constant 0 : index
      %c0_24 = arith.constant 0 : index
      %34 = vector.load %arg7[%c0_23, %c0_24] : memref<8x32xf32, #tpu.memory_space<vmem>>, vector<8x32xf32>
      tpu.vector_store %arg7[%c0_23, %c0_24], %33 {strides = array<i32>} : memref<8x32xf32, #tpu.memory_space<vmem>>, vector<8x32xf32>,
    } else {
    }
    return
  }
  func.func @transform_0(%arg0: i32, %arg1: i32) -> (i32, i32) {
    %c0_i32 = arith.constant 0 : i32
    %c0_i32_0 = arith.constant 0 : i32
    return %arg0, %c0_i32 : i32, i32
  }
  func.func @transform_1(%arg0: i32, %arg1: i32) -> (i32, i32) {
    %c0_i32 = arith.constant 0 : i32
    %c0_i32_0 = arith.constant 0 : i32
    return %c0_i32, %arg1 : i32, i32
  }
  func.func @transform_2(%arg0: i32, %arg1: i32) -> (i32, i32) {
    %c0_i32 = arith.constant 0 : i32
    %c0_i32_0 = arith.constant 0 : i32
    return %c0_i32, %arg1 : i32, i32
  }
  func.func @transform_3(%arg0: i32, %arg1: i32) -> (i32, i32) {
    %c0_i32 = arith.constant 0 : i32
    %c0_i32_0 = arith.constant 0 : i32
    return %arg1, %c0_i32 : i32, i32
  }
  func.func @transform_4(%arg0: i32, %arg1: i32) -> (i32, i32) {
    %c0_i32 = arith.constant 0 : i32
    %c0_i32_0 = arith.constant 0 : i32
    %c0_i32_1 = arith.constant 0 : i32
    return %c0_i32, %c0_i32_0 : i32, i32
  }
  func.func @transform_5(%arg0: i32, %arg1: i32) -> (i32, i32) {
    %c0_i32 = arith.constant 0 : i32
    %c0_i32_0 = arith.constant 0 : i32
    return %arg0, %c0_i32 : i32, i32
  }
}

</mosaic_0001>

<bundles_post_ra>
// kernel: gptj_mlp.1
= control target key start
LH: loop header
LB: loop body
LE: loop exit
PB: predicated region body
PF: predicated region fallthrough
CT: control target
= control target key end

     0   :  { %vm25_vm0 = vcmask 261120   ;;  %v336_v1 = vmov 0.0   ;;  %vm337_vm1 = vmmov 0   ;;  %s468_s0 = inlined_call_operand.vmem [shape: f32[8,32], index: 0, kind: input, shape index: {}]   ;;  %s469_s1 = inlined_call_operand.vmem [shape: f32[32,128], index: 1, kind: input, shape index: {}]   ;;  %s470_s2 = inlined_call_operand.vmem [shape: f32[1,128], index: 2, kind: input, shape index: {}]   ;;  %s471_s3 = inlined_call_operand.vmem [shape: f32[128,32], index: 3, kind: input, shape index: {}]   ;;  %s472_s4 = inlined_call_operand.vmem [shape: f32[1,32], index: 4, kind: input, shape index: {}]   ;;  %s473_s5 = inlined_call_operand.hbm [shape: f32[8,32], index: 5, kind: output, shape index: {}]  }
   0x1   :  { %v31_v0 = vld [vmem:[%s469_s1 + $0x18] sm:$0xff]  ;;  %263 = vmatprep.subr.mxu0 %v336_v1  ;;  %v30_v2 = vld [vmem:[%s469_s1 + $0x10] sm:$0xff]  ;;  %271 = vmatprep.mubr.msk.f32.mxu0 %vm337_vm1, %v336_v1  ;;  %26 = vst.msk [vmem:[#allocation2] sm:$0xff] %vm25_vm0, %v336_v1 }
   0x2   :  { %264 = vmatpush3.msra.mxu0 %v31_v0  ;;  %274 = vmatprep.subr.mxu1 %v336_v1 }
   0x3   :  { %10 = vsyncpa [#allocation4], 0  ;;  %265 = vmatprep.subr.mxu0 %v336_v1  ;;  %v29_v3 = vld [vmem:[%s469_s1 + $0x8] sm:$0xff]  ;;  %306 = vmatprep.mubr.msk.f32.mxu1 %vm337_vm1, %v336_v1  ;;  %v28_v4 = vld [vmem:[%s469_s1] sm:$0xff]  ;;  %s338_s8 = smov [#allocation3]  }
   0x4   :  { %266 = vmatpush3.msra.mxu0 %v30_v2  ;;  %v27_v5 = vld [vmem:[%s468_s0] sm:$0xff]  ;;  %v138_v6 = vld [vmem:[%s471_s3 + $0x78] sm:$0xff]  ;;  %v137_v7 = vld [vmem:[%s471_s3 + $0x70] sm:$0xff]  ;;  %s230_s9 = sshll.u32 %s338_s8, 4  ;;  %s231_s9 = int_to_ptr.vmem [resolvable:$true] %s230_s9 }
   0x5   :  { %267 = vmatprep.subr.mxu0 %v336_v1  ;;  %275 = vmatpush3.msra.mxu1 %v138_v6  ;;  %v136_v8 = vld [vmem:[%s471_s3 + $0x68] sm:$0xff]  ;;  %v135_v9 = vld [vmem:[%s471_s3 + $0x60] sm:$0xff]  ;;  %v134_v10 = vld [vmem:[%s471_s3 + $0x58] sm:$0xff]  ;;  %s314_s10 = scalar_lea.vmem %s231_s9, 128  ;;  %p319_p1 = scmp.lt.s32.totalorder %s231_s9, %s231_s9 }
   0x6   :  { %268 = vmatpush3.msra.mxu0 %v29_v3  ;;  %276 = vmatprep.subr.mxu1 %v336_v1  ;;  %v133_v11 = vld [vmem:[%s471_s3 + $0x50] sm:$0xff]  ;;  %v132_v12 = vld [vmem:[%s471_s3 + $0x48] sm:$0xff]  ;;  %v131_v13 = vld [vmem:[%s471_s3 + $0x40] sm:$0xff]  ;;  %p315_p0 = scmp.ne.s32.totalorder %s231_s9, %s314_s10  ;;  %p320_p2 = scmp.lt.s32.totalorder %s314_s10, %s314_s10 }
   0x7   :  { %269 = vmatprep.subr.mxu0 %v336_v1  ;;  %277 = vmatpush3.msra.mxu1 %v137_v7  ;;  %v130_v14 = vld [vmem:[%s471_s3 + $0x38] sm:$0xff]  ;;  %v129_v15 = vld [vmem:[%s471_s3 + $0x30] sm:$0xff]  ;;  %v128_v16 = vld [vmem:[%s471_s3 + $0x28] sm:$0xff] }
   0x8   :  { %270 = vmatpush3.msra.mxu0 %v28_v4  ;;  %278 = vmatprep.subr.mxu1 %v336_v1  ;;  %v127_v17 = vld [vmem:[%s471_s3 + $0x20] sm:$0xff]  ;;  %v126_v18 = vld [vmem:[%s471_s3 + $0x18] sm:$0xff]  ;;  %v125_v19 = vld [vmem:[%s471_s3 + $0x10] sm:$0xff]  ;;  %p321_p3 = por %p320_p2, %p319_p1 }
   0x9   :  { %272 = vmatmul.mubr.msk.f32.vlgmr.msra.gmra.mxu0 %vm25_vm0, %v27_v5  ;;  %279 = vmatpush3.msra.mxu1 %v136_v8  ;;  %v124_v20 = vld [vmem:[%s471_s3 + $0x8] sm:$0xff]  ;;  %v123_v21 = vld [vmem:[%s471_s3] sm:$0xff] }
   0xa   :  { %280 = vmatprep.subr.mxu1 %v336_v1  ;;  %v238_v22 = vld [vmem:[%s470_s2] ss:$0 sm:$0xff]  ;;  %p322_p4 = pnand %p321_p3, %p315_p0 }
   0xb   :  { %281 = vmatpush3.msra.mxu1 %v135_v9  ;;  %v122_v35 = vld [vmem:[#allocation2] sm:$0xff] }
   0xc   :  { %282 = vmatprep.subr.mxu1 %v336_v1  ;;  %v240_v39 = vld [vmem:[%s472_s4] ss:$0 sm:$0xff] }
   0xd   :  { %283 = vmatpush3.msra.mxu1 %v134_v10 }
   0xe   :  { %284 = vmatprep.subr.mxu1 %v336_v1 }
   0xf   :  { %285 = vmatpush3.msra.mxu1 %v133_v11 }
  0x10   :  { %286 = vmatprep.subr.mxu1 %v336_v1 }
  0x11   :  { %287 = vmatpush3.msra.mxu1 %v132_v12 }
  0x12   :  { %288 = vmatprep.subr.mxu1 %v336_v1 }
  0x13   :  { %289 = vmatpush3.msra.mxu1 %v131_v13 }
  0x14   :  { %290 = vmatprep.subr.mxu1 %v336_v1 }
  0x15   :  { %291 = vmatpush3.msra.mxu1 %v130_v14 }
  0x16   :  { %292 = vmatprep.subr.mxu1 %v336_v1 }
  0x17   :  { %293 = vmatpush3.msra.mxu1 %v129_v15 }
  0x18   :  { %294 = vmatprep.subr.mxu1 %v336_v1 }
  0x19   :  { %295 = vmatpush3.msra.mxu1 %v128_v16 }
  0x1a   :  { %296 = vmatprep.subr.mxu1 %v336_v1 }
  0x1b   :  { %297 = vmatpush3.msra.mxu1 %v127_v17 }
  0x1c   :  { %298 = vmatprep.subr.mxu1 %v336_v1 }
  0x1d   :  { %299 = vmatpush3.msra.mxu1 %v126_v18 }
  0x1e   :  { %300 = vmatprep.subr.mxu1 %v336_v1 }
  0x1f   :  { %301 = vmatpush3.msra.mxu1 %v125_v19 }
  0x20   :  { %302 = vmatprep.subr.mxu1 %v336_v1 }
  0x21   :  { %303 = vmatpush3.msra.mxu1 %v124_v20 }
  0x22   :  { %304 = vmatprep.subr.mxu1 %v336_v1 }
  0x23   :  { %305 = vmatpush3.msra.mxu1 %v123_v21 }
  0xc9   :  { %v109_v23 = vpop.f32.mrf.mxu0 }
  0xca   :  { %v110_v24 = vadd.f32 %v238_v22, %v109_v23 }
  0xcb   :  { %v273_v25 = vpop.f32.mrf.mxu0 }
  0xcc   :  { %v114_v26 = vmul.f32 0.044715, %v110_v24  ;;  %v113_v32 = vmul.f32 0.5, %v110_v24 }
  0xce   :  { %v115_v27 = vmul.f32 %v114_v26, %v110_v24 }
  0xd0   :  { %v116_v28 = vmul.f32 %v115_v27, %v110_v24 }
  0xd2   :  { %v117_v29 = vadd.f32 %v116_v28, %v110_v24 }
  0xd4   :  { %v118_v30 = vmul.f32 0.7978846, %v117_v29 }
  0xd6   :  { %312 = vtanh.f32 %v118_v30 }
  0xe3   :  { %v313_v31 = vpop.eup %312 }
  0xe4   :  { %v120_v33 = vadd.f32 1.0, %v313_v31 }
  0xe6   :  { %v121_v34 = vmul.f32 %v120_v33, %v113_v32 }
  0xe8   :  { %307 = vmatmul.mubr.f32.vlgmr.msra.gmra.mxu1 %v121_v34 }
 0x1a8   :  { %v205_v36 = vpop.f32.mrf.mxu1 }
 0x1a9   :  { %v209_v37 = vadd.f32 %v205_v36, %v122_v35 }
 0x1aa   :  { %v308_v38 = vpop.f32.mrf.mxu1 }
 0x1ab   :  { %210 = vst.msk [vmem:[#allocation2] sm:$0xff] %vm25_vm0, %v209_v37 }
 0x1b2   :  { %v214_v40 = vld [vmem:[#allocation2] sm:$0xff] }
 0x1b3   :  { %v222_v41 = vadd.f32 %v240_v39, %v214_v40 }
 0x1b5   :  { %223 = vst.msk [vmem:[#allocation3] sm:$0xff] %vm25_vm0, %v222_v41 }
 0x1b6   :  { %325 = shalt.err (!%p322_p4)
}
 0x1b7   :  { %233 = dma.vmem_to_hbm [thread:$0]  %s231_s9, 128, %s473_s5, [#allocation4]  }
 0x1b8   :  { %334 = dma.done.wait [#allocation4], 128  }
 0x1b9   :  { %335 = vsyncadd [#allocation4], 4294967168 }
 0x1ba   :  { %237 = vsyncpa [#allocation4], 1 }

</bundles_post_ra>
